<compile_context>
chip_gen: v7x
topology: tpu7x:2x2x1
jax: 0.10.0
libtpu: 0.0.40
codegen_flags: <defaults>
</compile_context>

<pallas_src>
import functools
import math

import jax
import jax.numpy as jnp
from jax.experimental import pallas as pl
from jax.experimental.pallas import tpu as pltpu


def _round_up(x: int, m: int) -> int:
    return (x + m - 1) // m * m


# ----------------------------------- kernel ------------------------------------
def _bn_relu_conv_kernel(scale_ref, shift_ref, bias_ref, mask_ref, x_ref, wt_ref,
                         o_ref, act_ref, cols_ref, *, offsets, cin_p, go):
    """Fused BN(scale/shift) + ReLU + 3x3 conv as one im2col matmul.

    Layout: channels on sublanes, flattened padded spatial on lanes.
      scale_ref, shift_ref : (Cin_p, 1)      folded BN affine (0 in padded rows)
      bias_ref             : (Cout_p, 1)     conv bias (0 in padded rows)
      mask_ref             : (1, Ge)         1.0 on interior (non-halo) positions
      x_ref                : (Cin_p, Ge)     zero-padded input, flattened spatial
      wt_ref               : (Cout_p, 9*Cin_p)  tap-major / channel-minor weights
      o_ref                : (Cout_p, Go)    conv output over the padded grid
      act_ref              : VMEM (Cin_p, Ge)     post-BN/ReLU activations
      cols_ref             : VMEM (9*Cin_p, Go)   im2col scratch
    """
    # BN + ReLU once over the whole block; one multiply zeroes the halo so the
    # shifted taps below read exact zero padding (no scratch re-zeroing, no
    # misaligned masked stores).
    act_ref[...] = (jnp.maximum(x_ref[...] * scale_ref[...] + shift_ref[...], 0.0)
                    * mask_ref[...])

    # Build the im2col matrix: 9 lane-shifted windows stacked on sublanes.
    # Writes are full-lane, sublane-aligned (offsets are multiples of Cin_p=8k).
    for t, off in enumerate(offsets):
        cols_ref[t * cin_p:(t + 1) * cin_p, :] = act_ref[:, off:off + go]

    # One MXU matmul: (Cout_p, 9*Cin_p) @ (9*Cin_p, Go), f32 accumulation.
    # TODO(synk): cast matmul operands to bf16 on v6e/v7x for MXU peak (kept fp32
    # here to hold the 1e-4 reference tolerance at these tiny shapes).
    o_ref[...] = (jnp.dot(wt_ref[...], cols_ref[...],
                          preferred_element_type=jnp.float32) + bias_ref[...])


# ------------------------------ per-block wrapper -------------------------------
def _conv_block(buf, c_in, gamma, beta, w, b, mask, geom, eps=1e-5):
    """One conv_block on the channel-major working buffer.

    buf  : (C_buf, Ge) zero-padded, spatially padded, lane-flattened activations
    c_in : number of valid channels currently stored in `buf`
    Returns the block output re-embedded in the same (Cout, Ge) buffer layout.
    """
    H, W, Hp, Wp, ND, G, Go, Ge = geom
    cout = w.shape[-1]
    cin_p = _round_up(c_in, 8)
    cout_p = _round_up(cout, 8)

    # BatchNorm batch statistics in ONE pass (sum + sum-of-squares); halo / tail
    # entries of buf are exactly zero, so a plain lane-sum is exact.
    cnt = float(ND * H * W)
    xs = buf[:c_in]
    s1 = jnp.sum(xs, axis=1)
    s2 = jnp.sum(xs * xs, axis=1)
    mean = s1 / cnt
    var = s2 / cnt - mean * mean                      # biased, as PyTorch BN uses
    inv = gamma * jax.lax.rsqrt(var + eps)
    scale = jnp.zeros((cin_p, 1), jnp.float32).at[:c_in, 0].set(inv)
    shift = jnp.zeros((cin_p, 1), jnp.float32).at[:c_in, 0].set(beta - mean * inv)
    bias = jnp.zeros((cout_p, 1), jnp.float32).at[:cout, 0].set(b)

    # Weights -> (Cout_p, 9*Cin_p), tap-major (kh*3+kw), channel-minor.
    wt = jnp.pad(w, ((0, 0), (0, 0), (0, cin_p - c_in), (0, cout_p - cout)))
    wt = jnp.transpose(wt, (3, 0, 1, 2)).reshape(cout_p, 9 * cin_p)

    offsets = tuple(kh * Wp + kw for kh in range(3) for kw in range(3))
    kernel = functools.partial(_bn_relu_conv_kernel,
                               offsets=offsets, cin_p=cin_p, go=Go)

    flops = 2 * ND * H * W * 9 * c_in * cout
    bytes_accessed = 4 * (cin_p * Ge + cout_p * 9 * cin_p + cout_p * Go + Ge)

    out = pl.pallas_call(
        kernel,
        out_shape=jax.ShapeDtypeStruct((cout_p, Go), jnp.float32),
        grid=(1,),
        in_specs=[
            pl.BlockSpec((cin_p, 1), lambda i: (0, 0)),            # scale
            pl.BlockSpec((cin_p, 1), lambda i: (0, 0)),            # shift
            pl.BlockSpec((cout_p, 1), lambda i: (0, 0)),           # bias
            pl.BlockSpec((1, Ge), lambda i: (0, 0)),               # interior mask
            pl.BlockSpec((cin_p, Ge), lambda i: (0, 0)),           # activations
            pl.BlockSpec((cout_p, 9 * cin_p), lambda i: (0, 0)),   # weights
        ],
        out_specs=pl.BlockSpec((cout_p, Go), lambda i: (0, 0)),
        scratch_shapes=[pltpu.VMEM((cin_p, Ge), jnp.float32),
                        pltpu.VMEM((9 * cin_p, Go), jnp.float32)],
        compiler_params=pltpu.CompilerParams(dimension_semantics=("parallel",)),
        cost_estimate=pl.CostEstimate(flops=flops, transcendentals=0,
                                      bytes_accessed=bytes_accessed),
    )(scale, shift, bias, mask, buf[:cin_p], wt)

    # Keep only the valid conv outputs and re-embed them in the padded/flattened
    # buffer layout (halo + lane tail back to zero).
    y = out[:cout, :G].reshape(cout, ND, Hp, Wp)[:, :, :H, :W]
    y = jnp.pad(y, ((0, 0), (0, 0), (1, 1), (1, 1))).reshape(cout, G)
    return jnp.pad(y, ((0, 0), (0, Ge - G)))


# ------------------------------ DenseBlock forward ------------------------------
def dense_block_forward(x_ncdhw, params, out_channels):
    """DenseBlock.forward: X = cat(X, blk(X)) along channels, per block.

    Uses one pre-allocated channel-major buffer; each block writes its Cout
    channel slice in place instead of re-concatenating the growing tensor.
    """
    N, C0, D, H, W = x_ncdhw.shape
    ND = N * D
    Hp, Wp = H + 2, W + 2
    G = ND * Hp * Wp                                   # padded flattened spatial
    Go = _round_up(G, 128)                             # lane-dense output length
    Ge = _round_up(Go + 2 * Wp + 2, 128)               # input length incl. tap halo
    num = len(params)
    c_final = C0 + num * out_channels
    c_buf = max([c_final] + [_round_up(C0 + i * out_channels, 8) for i in range(num)])

    # (C, N*D, H+2, W+2) zero-padded -> flattened lanes, channels on rows.
    x_cm = jnp.transpose(x_ncdhw, (1, 0, 2, 3, 4)).astype(jnp.float32)
    x_cm = x_cm.reshape(C0, ND, H, W)
    x_cm = jnp.pad(x_cm, ((0, 0), (0, 0), (1, 1), (1, 1))).reshape(C0, G)
    buf = jnp.zeros((c_buf, Ge), jnp.float32).at[:C0, :G].set(x_cm)

    # Interior (non-halo) mask in the padded/flattened coordinate system.
    g = jnp.arange(G)
    hp = (g // Wp) % Hp
    wp = g % Wp
    interior = ((hp >= 1) & (hp <= H) & (wp >= 1) & (wp <= W)).astype(jnp.float32)
    mask = jnp.zeros((1, Ge), jnp.float32).at[0, :G].set(interior)

    geom = (H, W, Hp, Wp, ND, G, Go, Ge)
    c_in = C0
    for gamma, beta, w, b in params:
        y = _conv_block(buf, c_in, gamma, beta, w, b, mask, geom)
        buf = buf.at[c_in:c_in + out_channels].set(y)
        c_in += out_channels

    out = buf[:c_final, :G].reshape(c_final, ND, Hp, Wp)[:, :, 1:H + 1, 1:W + 1]
    return jnp.transpose(out.reshape(c_final, N, D, H, W), (1, 0, 2, 3, 4))


# ----------------------------- pure-JAX reference -------------------------------
def _ref_conv_block(x_ndhwc, gamma, beta, w, b, eps=1e-5):
    mean = jnp.mean(x_ndhwc, axis=(0, 1, 2, 3))
    var = jnp.mean((x_ndhwc - mean) ** 2, axis=(0, 1, 2, 3))
    act = jnp.maximum((x_ndhwc - mean) / jnp.sqrt(var + eps) * gamma + beta, 0.0)
    w5 = w.reshape(1, 3, 3, w.shape[-2], w.shape[-1])          # (1,3,3,Cin,Cout)
    out = jax.lax.conv_general_dilated(
        act, w5, window_strides=(1, 1, 1),
        padding=((0, 0), (1, 1), (1, 1)),
        dimension_numbers=("NDHWC", "DHWIO", "NDHWC"))
    return out + b


def _ref_dense_block(x_ncdhw, params):
    x = jnp.transpose(x_ncdhw, (0, 2, 3, 4, 1)).astype(jnp.float32)
    for gamma, beta, w, b in params:
        x = jnp.concatenate([x, _ref_conv_block(x, gamma, beta, w, b)], axis=-1)
    return jnp.transpose(x, (0, 4, 1, 2, 3))


# ------------------------------------- main -------------------------------------
if __name__ == "__main__":
    num_convs = 2
    in_channels = 4
    out_channels = 4
    N, D, H, W = 2, 3, 8, 8   # input is NCDHW: (N, in_channels, D, H, W)

    key = jax.random.PRNGKey(0)
    params = []
    for i in range(num_convs):
        in_c = in_channels + i * out_channels
        key, kw_, kb_ = jax.random.split(key, 3)
        gamma = jnp.ones((in_c,), jnp.float32)          # BatchNorm3d default init
        beta = jnp.zeros((in_c,), jnp.float32)
        bound = 1.0 / math.sqrt(in_c * 3 * 3)           # Conv3d default-ish init
        w = jax.random.uniform(kw_, (3, 3, in_c, out_channels), jnp.float32,
                               minval=-bound, maxval=bound)
        b = jax.random.uniform(kb_, (out_channels,), jnp.float32,
                               minval=-bound, maxval=bound)
        params.append((gamma, beta, w, b))

    key, kx = jax.random.split(key)
    x = jax.random.normal(kx, (N, in_channels, D, H, W), jnp.float32)

    fwd = jax.jit(functools.partial(dense_block_forward, out_channels=out_channels))
    out = jax.block_until_ready(fwd(x, params))

    expected_channels = in_channels + num_convs * out_channels
    assert out.shape == (N, expected_channels, D, H, W), out.shape

    ref = jax.block_until_ready(_ref_dense_block(x, params))
    assert jnp.allclose(out, ref, atol=1e-4, rtol=1e-4), float(jnp.max(jnp.abs(out - ref)))

    print("KERNEL_OK")
</pallas_src>

<mosaic_0001>
module attributes {stable_mosaic.version = 11 : i64} {
  func.func @_bn_relu_conv_kernel(%arg0: i32, %arg1: memref<8x1xf32, #tpu.memory_space<vmem>>, %arg2: memref<8x1xf32, #tpu.memory_space<vmem>>, %arg3: memref<8x1xf32, #tpu.memory_space<vmem>>, %arg4: memref<1x768xf32, #tpu.memory_space<vmem>>, %arg5: memref<8x768xf32, #tpu.memory_space<vmem>>, %arg6: memref<8x72xf32, #tpu.memory_space<vmem>>, %arg7: memref<8x640xf32, #tpu.memory_space<vmem>>, %arg8: memref<8x768xf32, #tpu.memory_space<vmem>>, %arg9: memref<72x640xf32, #tpu.memory_space<vmem>>) attributes {dimension_semantics = [#tpu.dimension_semantics<parallel>], iteration_bounds = array<i64: 1>, scalar_prefetch = 0 : i64, scratch_operands = 2 : i64, tpu.core_type = #tpu.core_type<tc>, window_params = [{pipeline_mode = #tpu.pipeline_mode<synchronous>, transform_indices = @transform_0, window_bounds = array<i64: 8, 1>}, {pipeline_mode = #tpu.pipeline_mode<synchronous>, transform_indices = @transform_1, window_bounds = array<i64: 8, 1>}, {pipeline_mode = #tpu.pipeline_mode<synchronous>, transform_indices = @transform_2, window_bounds = array<i64: 8, 1>}, {pipeline_mode = #tpu.pipeline_mode<synchronous>, transform_indices = @transform_3, window_bounds = array<i64: 1, 768>}, {pipeline_mode = #tpu.pipeline_mode<synchronous>, transform_indices = @transform_4, window_bounds = array<i64: 8, 768>}, {pipeline_mode = #tpu.pipeline_mode<synchronous>, transform_indices = @transform_5, window_bounds = array<i64: 8, 72>}, {pipeline_mode = #tpu.pipeline_mode<synchronous>, transform_indices = @transform_6, window_bounds = array<i64: 8, 640>}]} {
    %c0 = arith.constant 0 : index
    %c0_0 = arith.constant 0 : index
    %0 = vector.load %arg5[%c0, %c0_0] : memref<8x768xf32, #tpu.memory_space<vmem>>, vector<8x768xf32>
    %c0_1 = arith.constant 0 : index
    %c0_2 = arith.constant 0 : index
    %1 = vector.load %arg1[%c0_1, %c0_2] : memref<8x1xf32, #tpu.memory_space<vmem>>, vector<8x1xf32>
    %2 = vector.broadcast %1 : vector<8x1xf32> to vector<8x768xf32>
    %3 = arith.mulf %0, %2 : vector<8x768xf32>
    %c0_3 = arith.constant 0 : index
    %c0_4 = arith.constant 0 : index
    %4 = vector.load %arg2[%c0_3, %c0_4] : memref<8x1xf32, #tpu.memory_space<vmem>>, vector<8x1xf32>
    %5 = vector.broadcast %4 : vector<8x1xf32> to vector<8x768xf32>
    %6 = arith.addf %3, %5 : vector<8x768xf32>
    %cst = arith.constant 0.000000e+00 : f32
    %7 = vector.broadcast %cst : f32 to vector<8x768xf32>
    %8 = arith.maximumf %6, %7 : vector<8x768xf32>
    %c0_5 = arith.constant 0 : index
    %c0_6 = arith.constant 0 : index
    %9 = vector.load %arg4[%c0_5, %c0_6] : memref<1x768xf32, #tpu.memory_space<vmem>>, vector<1x768xf32>
    %10 = vector.broadcast %9 : vector<1x768xf32> to vector<8x768xf32>
    %11 = arith.mulf %8, %10 : vector<8x768xf32>
    %c0_7 = arith.constant 0 : index
    %c0_8 = arith.constant 0 : index
    %12 = vector.load %arg8[%c0_7, %c0_8] : memref<8x768xf32, #tpu.memory_space<vmem>>, vector<8x768xf32>
    tpu.vector_store %arg8[%c0_7, %c0_8], %11 {strides = array<i32>} : memref<8x768xf32, #tpu.memory_space<vmem>>, vector<8x768xf32>,
    %c0_9 = arith.constant 0 : index
    %c0_10 = arith.constant 0 : index
    %13 = vector.load %arg8[%c0_9, %c0_10] : memref<8x768xf32, #tpu.memory_space<vmem>>, vector<8x640xf32>
    %c0_11 = arith.constant 0 : index
    %c0_12 = arith.constant 0 : index
    %14 = vector.load %arg9[%c0_11, %c0_12] : memref<72x640xf32, #tpu.memory_space<vmem>>, vector<8x640xf32>
    tpu.vector_store %arg9[%c0_11, %c0_12], %13 {strides = array<i32>} : memref<72x640xf32, #tpu.memory_space<vmem>>, vector<8x640xf32>,
    %c0_13 = arith.constant 0 : index
    %c1 = arith.constant 1 : index
    %15 = vector.load %arg8[%c0_13, %c1] : memref<8x768xf32, #tpu.memory_space<vmem>>, vector<8x640xf32>
    %c8 = arith.constant 8 : index
    %c0_14 = arith.constant 0 : index
    %16 = vector.load %arg9[%c8, %c0_14] : memref<72x640xf32, #tpu.memory_space<vmem>>, vector<8x640xf32>
    tpu.vector_store %arg9[%c8, %c0_14], %15 {strides = array<i32>} : memref<72x640xf32, #tpu.memory_space<vmem>>, vector<8x640xf32>,
    %c0_15 = arith.constant 0 : index
    %c2 = arith.constant 2 : index
    %17 = vector.load %arg8[%c0_15, %c2] : memref<8x768xf32, #tpu.memory_space<vmem>>, vector<8x640xf32>
    %c16 = arith.constant 16 : index
    %c0_16 = arith.constant 0 : index
    %18 = vector.load %arg9[%c16, %c0_16] : memref<72x640xf32, #tpu.memory_space<vmem>>, vector<8x640xf32>
    tpu.vector_store %arg9[%c16, %c0_16], %17 {strides = array<i32>} : memref<72x640xf32, #tpu.memory_space<vmem>>, vector<8x640xf32>,
    %c0_17 = arith.constant 0 : index
    %c10 = arith.constant 10 : index
    %19 = vector.load %arg8[%c0_17, %c10] : memref<8x768xf32, #tpu.memory_space<vmem>>, vector<8x640xf32>
    %c24 = arith.constant 24 : index
    %c0_18 = arith.constant 0 : index
    %20 = vector.load %arg9[%c24, %c0_18] : memref<72x640xf32, #tpu.memory_space<vmem>>, vector<8x640xf32>
    tpu.vector_store %arg9[%c24, %c0_18], %19 {strides = array<i32>} : memref<72x640xf32, #tpu.memory_space<vmem>>, vector<8x640xf32>,
    %c0_19 = arith.constant 0 : index
    %c11 = arith.constant 11 : index
    %21 = vector.load %arg8[%c0_19, %c11] : memref<8x768xf32, #tpu.memory_space<vmem>>, vector<8x640xf32>
    %c32 = arith.constant 32 : index
    %c0_20 = arith.constant 0 : index
    %22 = vector.load %arg9[%c32, %c0_20] : memref<72x640xf32, #tpu.memory_space<vmem>>, vector<8x640xf32>
    tpu.vector_store %arg9[%c32, %c0_20], %21 {strides = array<i32>} : memref<72x640xf32, #tpu.memory_space<vmem>>, vector<8x640xf32>,
    %c0_21 = arith.constant 0 : index
    %c12 = arith.constant 12 : index
    %23 = vector.load %arg8[%c0_21, %c12] : memref<8x768xf32, #tpu.memory_space<vmem>>, vector<8x640xf32>
    %c40 = arith.constant 40 : index
    %c0_22 = arith.constant 0 : index
    %24 = vector.load %arg9[%c40, %c0_22] : memref<72x640xf32, #tpu.memory_space<vmem>>, vector<8x640xf32>
    tpu.vector_store %arg9[%c40, %c0_22], %23 {strides = array<i32>} : memref<72x640xf32, #tpu.memory_space<vmem>>, vector<8x640xf32>,
    %c0_23 = arith.constant 0 : index
    %c20 = arith.constant 20 : index
    %25 = vector.load %arg8[%c0_23, %c20] : memref<8x768xf32, #tpu.memory_space<vmem>>, vector<8x640xf32>
    %c48 = arith.constant 48 : index
    %c0_24 = arith.constant 0 : index
    %26 = vector.load %arg9[%c48, %c0_24] : memref<72x640xf32, #tpu.memory_space<vmem>>, vector<8x640xf32>
    tpu.vector_store %arg9[%c48, %c0_24], %25 {strides = array<i32>} : memref<72x640xf32, #tpu.memory_space<vmem>>, vector<8x640xf32>,
    %c0_25 = arith.constant 0 : index
    %c21 = arith.constant 21 : index
    %27 = vector.load %arg8[%c0_25, %c21] : memref<8x768xf32, #tpu.memory_space<vmem>>, vector<8x640xf32>
    %c56 = arith.constant 56 : index
    %c0_26 = arith.constant 0 : index
    %28 = vector.load %arg9[%c56, %c0_26] : memref<72x640xf32, #tpu.memory_space<vmem>>, vector<8x640xf32>
    tpu.vector_store %arg9[%c56, %c0_26], %27 {strides = array<i32>} : memref<72x640xf32, #tpu.memory_space<vmem>>, vector<8x640xf32>,
    %c0_27 = arith.constant 0 : index
    %c22 = arith.constant 22 : index
    %29 = vector.load %arg8[%c0_27, %c22] : memref<8x768xf32, #tpu.memory_space<vmem>>, vector<8x640xf32>
    %c64 = arith.constant 64 : index
    %c0_28 = arith.constant 0 : index
    %30 = vector.load %arg9[%c64, %c0_28] : memref<72x640xf32, #tpu.memory_space<vmem>>, vector<8x640xf32>
    tpu.vector_store %arg9[%c64, %c0_28], %29 {strides = array<i32>} : memref<72x640xf32, #tpu.memory_space<vmem>>, vector<8x640xf32>,
    %c0_29 = arith.constant 0 : index
    %c0_30 = arith.constant 0 : index
    %31 = vector.load %arg6[%c0_29, %c0_30] : memref<8x72xf32, #tpu.memory_space<vmem>>, vector<8x72xf32>
    %c0_31 = arith.constant 0 : index
    %c0_32 = arith.constant 0 : index
    %32 = vector.load %arg9[%c0_31, %c0_32] : memref<72x640xf32, #tpu.memory_space<vmem>>, vector<72x640xf32>
    %cst_33 = arith.constant dense<0.000000e+00> : vector<8x640xf32>
    %33 = tpu.matmul %31, %32, %cst_33 {dimension_numbers = #tpu.dot_dimension_numbers<[1], [0], [0], [1], [0, 0, 1, 1], [], []>} : vector<8x72xf32>, vector<72x640xf32>, vector<8x640xf32> -> vector<8x640xf32>
    %c0_34 = arith.constant 0 : index
    %c0_35 = arith.constant 0 : index
    %34 = vector.load %arg3[%c0_34, %c0_35] : memref<8x1xf32, #tpu.memory_space<vmem>>, vector<8x1xf32>
    %35 = vector.broadcast %34 : vector<8x1xf32> to vector<8x640xf32>
    %36 = arith.addf %33, %35 : vector<8x640xf32>
    %c0_36 = arith.constant 0 : index
    %c0_37 = arith.constant 0 : index
    %37 = vector.load %arg7[%c0_36, %c0_37] : memref<8x640xf32, #tpu.memory_space<vmem>>, vector<8x640xf32>
    tpu.vector_store %arg7[%c0_36, %c0_37], %36 {strides = array<i32>} : memref<8x640xf32, #tpu.memory_space<vmem>>, vector<8x640xf32>,
    return
  }
  func.func @transform_0(%arg0: i32) -> (i32, i32) {
    %c0_i32 = arith.constant 0 : i32
    %c0_i32_0 = arith.constant 0 : i32
    %c0_i32_1 = arith.constant 0 : i32
    return %c0_i32, %c0_i32_0 : i32, i32
  }
  func.func @transform_1(%arg0: i32) -> (i32, i32) {
    %c0_i32 = arith.constant 0 : i32
    %c0_i32_0 = arith.constant 0 : i32
    %c0_i32_1 = arith.constant 0 : i32
    return %c0_i32, %c0_i32_0 : i32, i32
  }
  func.func @transform_2(%arg0: i32) -> (i32, i32) {
    %c0_i32 = arith.constant 0 : i32
    %c0_i32_0 = arith.constant 0 : i32
    %c0_i32_1 = arith.constant 0 : i32
    return %c0_i32, %c0_i32_0 : i32, i32
  }
  func.func @transform_3(%arg0: i32) -> (i32, i32) {
    %c0_i32 = arith.constant 0 : i32
    %c0_i32_0 = arith.constant 0 : i32
    %c0_i32_1 = arith.constant 0 : i32
    return %c0_i32, %c0_i32_0 : i32, i32
  }
  func.func @transform_4(%arg0: i32) -> (i32, i32) {
    %c0_i32 = arith.constant 0 : i32
    %c0_i32_0 = arith.constant 0 : i32
    %c0_i32_1 = arith.constant 0 : i32
    return %c0_i32, %c0_i32_0 : i32, i32
  }
  func.func @transform_5(%arg0: i32) -> (i32, i32) {
    %c0_i32 = arith.constant 0 : i32
    %c0_i32_0 = arith.constant 0 : i32
    %c0_i32_1 = arith.constant 0 : i32
    return %c0_i32, %c0_i32_0 : i32, i32
  }
  func.func @transform_6(%arg0: i32) -> (i32, i32) {
    %c0_i32 = arith.constant 0 : i32
    %c0_i32_0 = arith.constant 0 : i32
    %c0_i32_1 = arith.constant 0 : i32
    return %c0_i32, %c0_i32_0 : i32, i32
  }
}

module attributes {stable_mosaic.version = 11 : i64} {
  func.func @_bn_relu_conv_kernel(%arg0: i32, %arg1: memref<8x1xf32, #tpu.memory_space<vmem>>, %arg2: memref<8x1xf32, #tpu.memory_space<vmem>>, %arg3: memref<8x1xf32, #tpu.memory_space<vmem>>, %arg4: memref<1x768xf32, #tpu.memory_space<vmem>>, %arg5: memref<8x768xf32, #tpu.memory_space<vmem>>, %arg6: memref<8x72xf32, #tpu.memory_space<vmem>>, %arg7: memref<8x640xf32, #tpu.memory_space<vmem>>, %arg8: memref<8x768xf32, #tpu.memory_space<vmem>>, %arg9: memref<72x640xf32, #tpu.memory_space<vmem>>) attributes {dimension_semantics = [#tpu.dimension_semantics<parallel>], iteration_bounds = array<i64: 1>, scalar_prefetch = 0 : i64, scratch_operands = 2 : i64, tpu.core_type = #tpu.core_type<tc>, window_params = [{pipeline_mode = #tpu.pipeline_mode<synchronous>, transform_indices = @transform_0, window_bounds = array<i64: 8, 1>}, {pipeline_mode = #tpu.pipeline_mode<synchronous>, transform_indices = @transform_1, window_bounds = array<i64: 8, 1>}, {pipeline_mode = #tpu.pipeline_mode<synchronous>, transform_indices = @transform_2, window_bounds = array<i64: 8, 1>}, {pipeline_mode = #tpu.pipeline_mode<synchronous>, transform_indices = @transform_3, window_bounds = array<i64: 1, 768>}, {pipeline_mode = #tpu.pipeline_mode<synchronous>, transform_indices = @transform_4, window_bounds = array<i64: 8, 768>}, {pipeline_mode = #tpu.pipeline_mode<synchronous>, transform_indices = @transform_5, window_bounds = array<i64: 8, 72>}, {pipeline_mode = #tpu.pipeline_mode<synchronous>, transform_indices = @transform_6, window_bounds = array<i64: 8, 640>}]} {
    %c0 = arith.constant 0 : index
    %c0_0 = arith.constant 0 : index
    %0 = vector.load %arg5[%c0, %c0_0] : memref<8x768xf32, #tpu.memory_space<vmem>>, vector<8x768xf32>
    %c0_1 = arith.constant 0 : index
    %c0_2 = arith.constant 0 : index
    %1 = vector.load %arg1[%c0_1, %c0_2] : memref<8x1xf32, #tpu.memory_space<vmem>>, vector<8x1xf32>
    %2 = vector.broadcast %1 : vector<8x1xf32> to vector<8x768xf32>
    %3 = arith.mulf %0, %2 : vector<8x768xf32>
    %c0_3 = arith.constant 0 : index
    %c0_4 = arith.constant 0 : index
    %4 = vector.load %arg2[%c0_3, %c0_4] : memref<8x1xf32, #tpu.memory_space<vmem>>, vector<8x1xf32>
    %5 = vector.broadcast %4 : vector<8x1xf32> to vector<8x768xf32>
    %6 = arith.addf %3, %5 : vector<8x768xf32>
    %cst = arith.constant 0.000000e+00 : f32
    %7 = vector.broadcast %cst : f32 to vector<8x768xf32>
    %8 = arith.maximumf %6, %7 : vector<8x768xf32>
    %c0_5 = arith.constant 0 : index
    %c0_6 = arith.constant 0 : index
    %9 = vector.load %arg4[%c0_5, %c0_6] : memref<1x768xf32, #tpu.memory_space<vmem>>, vector<1x768xf32>
    %10 = vector.broadcast %9 : vector<1x768xf32> to vector<8x768xf32>
    %11 = arith.mulf %8, %10 : vector<8x768xf32>
    %c0_7 = arith.constant 0 : index
    %c0_8 = arith.constant 0 : index
    %12 = vector.load %arg8[%c0_7, %c0_8] : memref<8x768xf32, #tpu.memory_space<vmem>>, vector<8x768xf32>
    tpu.vector_store %arg8[%c0_7, %c0_8], %11 {strides = array<i32>} : memref<8x768xf32, #tpu.memory_space<vmem>>, vector<8x768xf32>,
    %c0_9 = arith.constant 0 : index
    %c0_10 = arith.constant 0 : index
    %13 = vector.load %arg8[%c0_9, %c0_10] : memref<8x768xf32, #tpu.memory_space<vmem>>, vector<8x640xf32>
    %c0_11 = arith.constant 0 : index
    %c0_12 = arith.constant 0 : index
    %14 = vector.load %arg9[%c0_11, %c0_12] : memref<72x640xf32, #tpu.memory_space<vmem>>, vector<8x640xf32>
    tpu.vector_store %arg9[%c0_11, %c0_12], %13 {strides = array<i32>} : memref<72x640xf32, #tpu.memory_space<vmem>>, vector<8x640xf32>,
    %c0_13 = arith.constant 0 : index
    %c1 = arith.constant 1 : index
    %15 = vector.load %arg8[%c0_13, %c1] : memref<8x768xf32, #tpu.memory_space<vmem>>, vector<8x640xf32>
    %c8 = arith.constant 8 : index
    %c0_14 = arith.constant 0 : index
    %16 = vector.load %arg9[%c8, %c0_14] : memref<72x640xf32, #tpu.memory_space<vmem>>, vector<8x640xf32>
    tpu.vector_store %arg9[%c8, %c0_14], %15 {strides = array<i32>} : memref<72x640xf32, #tpu.memory_space<vmem>>, vector<8x640xf32>,
    %c0_15 = arith.constant 0 : index
    %c2 = arith.constant 2 : index
    %17 = vector.load %arg8[%c0_15, %c2] : memref<8x768xf32, #tpu.memory_space<vmem>>, vector<8x640xf32>
    %c16 = arith.constant 16 : index
    %c0_16 = arith.constant 0 : index
    %18 = vector.load %arg9[%c16, %c0_16] : memref<72x640xf32, #tpu.memory_space<vmem>>, vector<8x640xf32>
    tpu.vector_store %arg9[%c16, %c0_16], %17 {strides = array<i32>} : memref<72x640xf32, #tpu.memory_space<vmem>>, vector<8x640xf32>,
    %c0_17 = arith.constant 0 : index
    %c10 = arith.constant 10 : index
    %19 = vector.load %arg8[%c0_17, %c10] : memref<8x768xf32, #tpu.memory_space<vmem>>, vector<8x640xf32>
    %c24 = arith.constant 24 : index
    %c0_18 = arith.constant 0 : index
    %20 = vector.load %arg9[%c24, %c0_18] : memref<72x640xf32, #tpu.memory_space<vmem>>, vector<8x640xf32>
    tpu.vector_store %arg9[%c24, %c0_18], %19 {strides = array<i32>} : memref<72x640xf32, #tpu.memory_space<vmem>>, vector<8x640xf32>,
    %c0_19 = arith.constant 0 : index
    %c11 = arith.constant 11 : index
    %21 = vector.load %arg8[%c0_19, %c11] : memref<8x768xf32, #tpu.memory_space<vmem>>, vector<8x640xf32>
    %c32 = arith.constant 32 : index
    %c0_20 = arith.constant 0 : index
    %22 = vector.load %arg9[%c32, %c0_20] : memref<72x640xf32, #tpu.memory_space<vmem>>, vector<8x640xf32>
    tpu.vector_store %arg9[%c32, %c0_20], %21 {strides = array<i32>} : memref<72x640xf32, #tpu.memory_space<vmem>>, vector<8x640xf32>,
    %c0_21 = arith.constant 0 : index
    %c12 = arith.constant 12 : index
    %23 = vector.load %arg8[%c0_21, %c12] : memref<8x768xf32, #tpu.memory_space<vmem>>, vector<8x640xf32>
    %c40 = arith.constant 40 : index
    %c0_22 = arith.constant 0 : index
    %24 = vector.load %arg9[%c40, %c0_22] : memref<72x640xf32, #tpu.memory_space<vmem>>, vector<8x640xf32>
    tpu.vector_store %arg9[%c40, %c0_22], %23 {strides = array<i32>} : memref<72x640xf32, #tpu.memory_space<vmem>>, vector<8x640xf32>,
    %c0_23 = arith.constant 0 : index
    %c20 = arith.constant 20 : index
    %25 = vector.load %arg8[%c0_23, %c20] : memref<8x768xf32, #tpu.memory_space<vmem>>, vector<8x640xf32>
    %c48 = arith.constant 48 : index
    %c0_24 = arith.constant 0 : index
    %26 = vector.load %arg9[%c48, %c0_24] : memref<72x640xf32, #tpu.memory_space<vmem>>, vector<8x640xf32>
    tpu.vector_store %arg9[%c48, %c0_24], %25 {strides = array<i32>} : memref<72x640xf32, #tpu.memory_space<vmem>>, vector<8x640xf32>,
    %c0_25 = arith.constant 0 : index
    %c21 = arith.constant 21 : index
    %27 = vector.load %arg8[%c0_25, %c21] : memref<8x768xf32, #tpu.memory_space<vmem>>, vector<8x640xf32>
    %c56 = arith.constant 56 : index
    %c0_26 = arith.constant 0 : index
    %28 = vector.load %arg9[%c56, %c0_26] : memref<72x640xf32, #tpu.memory_space<vmem>>, vector<8x640xf32>
    tpu.vector_store %arg9[%c56, %c0_26], %27 {strides = array<i32>} : memref<72x640xf32, #tpu.memory_space<vmem>>, vector<8x640xf32>,
    %c0_27 = arith.constant 0 : index
    %c22 = arith.constant 22 : index
    %29 = vector.load %arg8[%c0_27, %c22] : memref<8x768xf32, #tpu.memory_space<vmem>>, vector<8x640xf32>
    %c64 = arith.constant 64 : index
    %c0_28 = arith.constant 0 : index
    %30 = vector.load %arg9[%c64, %c0_28] : memref<72x640xf32, #tpu.memory_space<vmem>>, vector<8x640xf32>
    tpu.vector_store %arg9[%c64, %c0_28], %29 {strides = array<i32>} : memref<72x640xf32, #tpu.memory_space<vmem>>, vector<8x640xf32>,
    %c0_29 = arith.constant 0 : index
    %c0_30 = arith.constant 0 : index
    %31 = vector.load %arg6[%c0_29, %c0_30] : memref<8x72xf32, #tpu.memory_space<vmem>>, vector<8x72xf32>
    %c0_31 = arith.constant 0 : index
    %c0_32 = arith.constant 0 : index
    %32 = vector.load %arg9[%c0_31, %c0_32] : memref<72x640xf32, #tpu.memory_space<vmem>>, vector<72x640xf32>
    %cst_33 = arith.constant dense<0.000000e+00> : vector<8x640xf32>
    %33 = tpu.matmul %31, %32, %cst_33 {dimension_numbers = #tpu.dot_dimension_numbers<[1], [0], [0], [1], [0, 0, 1, 1], [], []>} : vector<8x72xf32>, vector<72x640xf32>, vector<8x640xf32> -> vector<8x640xf32>
    %c0_34 = arith.constant 0 : index
    %c0_35 = arith.constant 0 : index
    %34 = vector.load %arg3[%c0_34, %c0_35] : memref<8x1xf32, #tpu.memory_space<vmem>>, vector<8x1xf32>
    %35 = vector.broadcast %34 : vector<8x1xf32> to vector<8x640xf32>
    %36 = arith.addf %33, %35 : vector<8x640xf32>
    %c0_36 = arith.constant 0 : index
    %c0_37 = arith.constant 0 : index
    %37 = vector.load %arg7[%c0_36, %c0_37] : memref<8x640xf32, #tpu.memory_space<vmem>>, vector<8x640xf32>
    tpu.vector_store %arg7[%c0_36, %c0_37], %36 {strides = array<i32>} : memref<8x640xf32, #tpu.memory_space<vmem>>, vector<8x640xf32>,
    return
  }
  func.func @transform_0(%arg0: i32) -> (i32, i32) {
    %c0_i32 = arith.constant 0 : i32
    %c0_i32_0 = arith.constant 0 : i32
    %c0_i32_1 = arith.constant 0 : i32
    return %c0_i32, %c0_i32_0 : i32, i32
  }
  func.func @transform_1(%arg0: i32) -> (i32, i32) {
    %c0_i32 = arith.constant 0 : i32
    %c0_i32_0 = arith.constant 0 : i32
    %c0_i32_1 = arith.constant 0 : i32
    return %c0_i32, %c0_i32_0 : i32, i32
  }
  func.func @transform_2(%arg0: i32) -> (i32, i32) {
    %c0_i32 = arith.constant 0 : i32
    %c0_i32_0 = arith.constant 0 : i32
    %c0_i32_1 = arith.constant 0 : i32
    return %c0_i32, %c0_i32_0 : i32, i32
  }
  func.func @transform_3(%arg0: i32) -> (i32, i32) {
    %c0_i32 = arith.constant 0 : i32
    %c0_i32_0 = arith.constant 0 : i32
    %c0_i32_1 = arith.constant 0 : i32
    return %c0_i32, %c0_i32_0 : i32, i32
  }
  func.func @transform_4(%arg0: i32) -> (i32, i32) {
    %c0_i32 = arith.constant 0 : i32
    %c0_i32_0 = arith.constant 0 : i32
    %c0_i32_1 = arith.constant 0 : i32
    return %c0_i32, %c0_i32_0 : i32, i32
  }
  func.func @transform_5(%arg0: i32) -> (i32, i32) {
    %c0_i32 = arith.constant 0 : i32
    %c0_i32_0 = arith.constant 0 : i32
    %c0_i32_1 = arith.constant 0 : i32
    return %c0_i32, %c0_i32_0 : i32, i32
  }
  func.func @transform_6(%arg0: i32) -> (i32, i32) {
    %c0_i32 = arith.constant 0 : i32
    %c0_i32_0 = arith.constant 0 : i32
    %c0_i32_1 = arith.constant 0 : i32
    return %c0_i32, %c0_i32_0 : i32, i32
  }
}

</mosaic_0001>

<bundles_post_ra>
// kernel: dense_block_forward.2
= control target key start
LH: loop header
LB: loop body
LE: loop exit
PB: predicated region body
PF: predicated region fallthrough
CT: control target
= control target key end

     0   :  { %v891_v0 = vmov 0   ;;  %v61_v3 = vlaneseq  ;;  %s893_s9 = smov 127   ;;  %s894_s14 = smov 117   ;;  %v899_v53 = vmov 0.0   ;;  %vm137_vm0 = vcmask 1039360   ;;  %s1152_s0 = inlined_call_operand.vmem [shape: f32[8,1], index: 0, kind: input, shape index: {}]   ;;  %s1153_s1 = inlined_call_operand.vmem [shape: f32[8,1], index: 1, kind: input, shape index: {}]   ;;  %s1154_s4 = inlined_call_operand.vmem [shape: f32[8,768], index: 4, kind: input, shape index: {}]   ;;  %s1155_s3 = inlined_call_operand.vmem [shape: f32[1,768], index: 3, kind: input, shape index: {}]   ;;  %s1156_s2 = inlined_call_operand.vmem [shape: f32[8,1], index: 2, kind: input, shape index: {}]   ;;  %s1157_s5 = inlined_call_operand.vmem [shape: f32[8,72], index: 5, kind: input, shape index: {}]   ;;  %s1158_s6 = inlined_call_operand.vmem [shape: f32[8,640], index: 6, kind: output, shape index: {}]  }
   0x1   :  { %800 = vset.pattern.permute.xlu0 %v891_v0  ;;  %v29_v1 = vld [vmem:[%s1152_s0] sm:$0xff]  ;;  %v24_v6 = vld [vmem:[%s1154_s4 + $0x8] sm:$0xff]  ;;  %v25_v7 = vld [vmem:[%s1154_s4 + $0x10] sm:$0xff]  ;;  %s895_s15 = smov 118   ;;  %s897_s16 = smov 116   ;;  %553 = vmatprep.mubr.f32.mxu0 %v899_v53  ;;  %vm177_vm1 = vcmask 1031168  }
   0x2   :  { %32 = vperm.xlu0 %800, %v29_v1   ;;  %v41_v2 = vld [vmem:[%s1153_s1] sm:$0xff]  ;;  %v62_v4 = vshrl.u32 %v61_v3, 7  ;;  %v26_v8 = vld [vmem:[%s1154_s4 + $0x18] sm:$0xff]  ;;  %v28_v39 = vld [vmem:[%s1154_s4 + $0x28] sm:$0xff]  ;;  %s898_s17 = smov 107   ;;  %624 = vmatprep.mubr.f32.mxu1 %v899_v53  ;;  %s900_s18 = smov 106  }
   0x3   :  { %v23_v5 = vld [vmem:[%s1154_s4] sm:$0xff]  ;;  %vm217_vm2 = vcmask 965632   ;;  %vm257_vm3 = vcmask 957440   ;;  %vm297_vm4 = vcmask 949248   ;;  %vm337_vm5 = vcmask 883712  }
   0x4   :  { %v67_v10 = vsub.s32 1, %v62_v4  ;;  %v71_v11 = vsub.s32 2, %v62_v4  ;;  %v59_v12 = vld [vmem:[%s1155_s3] sm:$0x3f]  ;;  %v63_v13 = vsub.s32 0, %v62_v4  ;;  %v75_v14 = vsub.s32 3, %v62_v4 }
   0x5   :  { %s892_s3 = smov 126   ;;  %v27_v38 = vld [vmem:[%s1154_s4 + $0x20] sm:$0xff]  ;;  %v79_v42 = vsub.s32 4, %v62_v4  ;;  %v83_v43 = vsub.s32 5, %v62_v4  ;;  %s896_s4 = smov 108   ;;  %vm377_vm6 = vcmask 875520  }
   0x6   :  { %44 = vperm.xlu0 %800, %v41_v2   ;;  %v68_v19 = vrot.slane %v59_v12, %v67_v10  ;;  %v72_v20 = vrot.slane %v59_v12, %v71_v11  ;;  %v64_v26 = vrot.slane %v59_v12, %v63_v13  ;;  %v76_v27 = vrot.slane %v59_v12, %v75_v14  ;;  %v479_v55 = vld [vmem:[%s1156_s2] sm:$0xff] }
   0x7   :  { %v80_v46 = vrot.slane %v59_v12, %v79_v42  ;;  %v84_v47 = vrot.slane %v59_v12, %v83_v43  ;;  %vm417_vm7 = vcmask 867328   ;;  %vm485_vm8 = vcmask 588800  }
   0x8   :  { %vm902_vm9 = vmmov 0  }
  0x81   :  { %v33_v9 = vpop.permute.xlu0 %32 }
  0x82   :  { %v35_v15 = vmul.f32 %v33_v9, %v23_v5  ;;  %v36_v16 = vmul.f32 %v33_v9, %v24_v6  ;;  %v37_v17 = vmul.f32 %v33_v9, %v25_v7  ;;  %v38_v18 = vmul.f32 %v33_v9, %v26_v8 }
  0x83   :  { %v39_v40 = vmul.f32 %v33_v9, %v27_v38  ;;  %v40_v41 = vmul.f32 %v33_v9, %v28_v39 }
  0x85   :  { %v45_v21 = vpop.permute.xlu0 %44 }
  0x86   :  { %v47_v22 = vadd.f32 %v45_v21, %v35_v15  ;;  %v48_v23 = vadd.f32 %v45_v21, %v36_v16  ;;  %v49_v24 = vadd.f32 %v45_v21, %v37_v17  ;;  %v50_v25 = vadd.f32 %v45_v21, %v38_v18 }
  0x87   :  { %v51_v44 = vadd.f32 %v45_v21, %v39_v40  ;;  %v52_v45 = vadd.f32 %v45_v21, %v40_v41 }
  0x88   :  { %v53_v28 = vmax.f32 %v47_v22, 0.0  ;;  %v54_v29 = vmax.f32 %v48_v23, 0.0  ;;  %v55_v30 = vmax.f32 %v49_v24, 0.0  ;;  %v56_v31 = vmax.f32 %v50_v25, 0.0 }
  0x89   :  { %v57_v48 = vmax.f32 %v51_v44, 0.0  ;;  %v58_v49 = vmax.f32 %v52_v45, 0.0 }
  0x8a   :  { %v959_v32 = vmul.f32 %v68_v19, %v54_v29  ;;  %v961_v33 = vmul.f32 %v72_v20, %v55_v30  ;;  %v963_v34 = vmul.f32 %v64_v26, %v53_v28  ;;  %v965_v35 = vmul.f32 %v76_v27, %v56_v31 }
  0x8b   :  { %v986_v50 = vmul.f32 %v80_v46, %v57_v48  ;;  %v96_v51 = vmul.f32 %v84_v47, %v58_v49 }
  0x8c   :  { %v811_v36 = vpack.i.bf16 %v961_v33, %v959_v32  ;;  %v821_v37 = vpack.i.bf16 %v965_v35, %v963_v34 }
  0x8d   :  { %v856_v52 = vpack.i.bf16 %v96_v51, %v986_v50  ;;  %v886_v54 = vpack.i.bf16 %v986_v50, %v965_v35 }
  0x8e   :  { %812 = vrot.lane.b32.xlu0 %v811_v36, %s892_s3  ;;  %802 = vrot.lane.b32.xlu1 %v811_v36, %s893_s9 }
  0x92   :  { %822 = vrot.lane.b32.xlu0 %v821_v37, %s892_s3  ;;  %807 = vrot.lane.b32.xlu1 %v821_v37, %s893_s9 }
  0x96   :  { %832 = vrot.lane.b32.xlu0 %v811_v36, %s894_s14  ;;  %817 = vrot.lane.b32.xlu1 %v811_v36, %s895_s15 }
  0x9a   :  { %842 = vrot.lane.b32.xlu0 %v821_v37, %s894_s14  ;;  %827 = vrot.lane.b32.xlu1 %v821_v37, %s895_s15 }
  0x9e   :  { %847 = vrot.lane.b32.xlu0 %v811_v36, %s896_s4  ;;  %837 = vrot.lane.b32.xlu1 %v811_v36, %s897_s16 }
  0xa2   :  { %325 = vrot.lane.b32.xlu0 %v963_v34, %s896_s4  ;;  %285 = vrot.lane.b32.xlu1 %v963_v34, %s897_s16 }
  0xa6   :  { %857 = vrot.lane.b32.xlu0 %v856_v52, %s893_s9  ;;  %852 = vrot.lane.b32.xlu1 %v811_v36, %s898_s17 }
  0xaa   :  { %409 = vrot.lane.b32.xlu0 %v961_v33, %s900_s18  ;;  %365 = vrot.lane.b32.xlu1 %v963_v34, %s898_s17 }
  0xae   :  { %862 = vrot.lane.b32.xlu0 %v856_v52, %s892_s3  ;;  %407 = vrot.lane.b32.xlu1 %v959_v32, %s900_s18 }
  0xb2   :  { %872 = vrot.lane.b32.xlu0 %v856_v52, %s894_s14  ;;  %405 = vrot.lane.b32.xlu1 %v963_v34, %s900_s18 }
  0xb6   :  { %295 = vrot.lane.b32.xlu0 %v96_v51, %s897_s16  ;;  %867 = vrot.lane.b32.xlu1 %v856_v52, %s895_s15 }
  0xba   :  { %887 = vrot.lane.b32.xlu0 %v886_v54, %s898_s17  ;;  %877 = vrot.lane.b32.xlu1 %v886_v54, %s897_s16 }
  0xbe   :  { %375 = vrot.lane.b32.xlu0 %v96_v51, %s898_s17  ;;  %882 = vrot.lane.b32.xlu1 %v886_v54, %s896_s4 }
  0xc2   :  { %413 = vrot.lane.b32.xlu0 %v986_v50, %s900_s18  ;;  %335 = vrot.lane.b32.xlu1 %v96_v51, %s896_s4 }
  0xc6   :  { %482 = vperm.xlu0 %800, %v479_v55   ;;  %411 = vrot.lane.b32.xlu1 %v965_v35, %s900_s18 }
  0xca   :  { %415 = vrot.lane.b32.xlu1 %v96_v51, %s900_s18 }
 0x100   :  { %v1011_v56 = vpop.permute.xlu0 %812  ;;  %v1013_v57 = vpop.permute.xlu1 %802 }
 0x101   :  { %v805_v58 = vunpack.i.h.bf16 %v1013_v57  ;;  %v804_v59 = vunpack.i.l.bf16 %v1013_v57  ;;  %v815_v1 = vunpack.i.h.bf16 %v1011_v56  ;;  %v814_v2 = vunpack.i.l.bf16 %v1011_v56 }
 0x103   :  { %v139_v60 = vsel %vm137_vm0, %v804_v59, %v805_v58  ;;  %v179_v10 = vsel %vm177_vm1, %v814_v2, %v815_v1 }
 0x104   :  { %v1018_v61 = vpop.permute.xlu0 %822  ;;  %v808_v62 = vpop.permute.xlu1 %807  ;;  %v744_v63 = vpack.c.bf16 %v139_v60, %v959_v32 }
 0x105   :  { %v809_v0 = vunpack.i.l.bf16 %v808_v62  ;;  %v824_v9 = vunpack.i.l.bf16 %v1018_v61 }
 0x106   :  { %745 = vmatprep.subr.bf16.mxu0 %v744_v63 }
 0x107   :  { %v138_v3 = vsel %vm137_vm0, %v809_v0, %v804_v59  ;;  %v178_v18 = vsel %vm177_vm1, %v824_v9, %v814_v2 }
 0x108   :  { %v1024_v4 = vpop.permute.xlu0 %832  ;;  %v1026_v5 = vpop.permute.xlu1 %817  ;;  %v746_v6 = vpack.c.bf16 %v138_v3, %v963_v34  ;;  %v810_v34 = vunpack.i.h.bf16 %v808_v62 }
 0x109   :  { %v820_v7 = vunpack.i.h.bf16 %v1026_v5  ;;  %v819_v8 = vunpack.i.l.bf16 %v1026_v5  ;;  %v835_v16 = vunpack.i.h.bf16 %v1024_v4  ;;  %v834_v17 = vunpack.i.l.bf16 %v1024_v4 }
 0x10a   :  { %747 = vmatpush1.bf16.msra.mxu0 %v746_v6  ;;  %v140_v44 = vsel %vm137_vm0, %v805_v58, %v810_v34 }
 0x10b   :  { %v219_v11 = vsel %vm217_vm2, %v819_v8, %v820_v7  ;;  %v259_v26 = vsel %vm257_vm3, %v834_v17, %v835_v16  ;;  %v762_v57 = vpack.c.bf16 %v140_v44, %v961_v33  ;;  %v1088_v33 = vld [vmem:[%s1157_s5] sm:$0xff] }
 0x10c   :  { %v1038_v12 = vpop.permute.xlu0 %842  ;;  %v1040_v13 = vpop.permute.xlu1 %827  ;;  %v748_v14 = vpack.c.bf16 %v219_v11, %v179_v10  ;;  %v901_v11 = vmov 0.0|0.0  }
 0x10d   :  { %v829_v15 = vunpack.i.l.bf16 %v1040_v13  ;;  %v844_v23 = vunpack.i.l.bf16 %v1038_v12  ;;  %v830_v6 = vunpack.i.h.bf16 %v1040_v13  ;;  %v845_v13 = vunpack.i.h.bf16 %v1038_v12 }
 0x10e   :  { %749 = vmatprep.subr.bf16.mxu0 %v748_v14  ;;  %v825_v14 = vunpack.i.h.bf16 %v1018_v61 }
 0x10f   :  { %v218_v19 = vsel %vm217_vm2, %v829_v15, %v819_v8  ;;  %v258_v31 = vsel %vm257_vm3, %v844_v23, %v834_v17  ;;  %v220_v23 = vsel %vm217_vm2, %v820_v7, %v830_v6  ;;  %v260_v7 = vsel %vm257_vm3, %v835_v16, %v845_v13 }
 0x110   :  { %v1047_v20 = vpop.permute.xlu0 %847  ;;  %v1049_v21 = vpop.permute.xlu1 %837  ;;  %v750_v22 = vpack.c.bf16 %v218_v19, %v178_v18 }
 0x111   :  { %v840_v24 = vunpack.i.h.bf16 %v1049_v21  ;;  %v839_v25 = vunpack.i.l.bf16 %v1049_v21  ;;  %v850_v37 = vunpack.i.h.bf16 %v1047_v20  ;;  %v849_v38 = vunpack.i.l.bf16 %v1047_v20 }
 0x112   :  { %751 = vmatpush1.bf16.msra.mxu0 %v750_v22 }
 0x113   :  { %v299_v27 = vsel %vm297_vm4, %v839_v25, %v840_v24  ;;  %v339_v45 = vsel %vm337_vm5, %v849_v38, %v850_v37 }
 0x114   :  { %v326_v28 = vpop.permute.xlu0 %325  ;;  %v286_v29 = vpop.permute.xlu1 %285  ;;  %v752_v30 = vpack.c.bf16 %v299_v27, %v259_v26 }
 0x115   :  { %v298_v32 = vsel %vm297_vm4, %v286_v29, %v839_v25  ;;  %v338_v54 = vsel %vm337_vm5, %v326_v28, %v849_v38 }
 0x116   :  { %v754_v36 = vpack.c.bf16 %v298_v32, %v258_v31  ;;  %753 = vmatprep.subr.bf16.mxu0 %v752_v30  ;;  %v180_v31 = vsel %vm177_vm1, %v815_v1, %v825_v14 }
 0x118   :  { %v858_v39 = vpop.permute.xlu0 %857  ;;  %v1064_v40 = vpop.permute.xlu1 %852  ;;  %755 = vmatpush1.bf16.msra.mxu0 %v754_v36 }
 0x119   :  { %v859_v41 = vunpack.i.l.bf16 %v858_v39  ;;  %v855_v42 = vunpack.i.h.bf16 %v1064_v40  ;;  %v854_v43 = vunpack.i.l.bf16 %v1064_v40  ;;  %v860_v59 = vunpack.i.h.bf16 %v858_v39 }
 0x11b   :  { %v379_v46 = vsel %vm377_vm6, %v854_v43, %v855_v42  ;;  %v141_v47 = vsel %vm137_vm0, %v810_v34, %v859_v41  ;;  %v766_v34 = vpack.c.bf16 %v220_v23, %v180_v31 }
 0x11c   :  { %v1076_v48 = vpop.permute.xlu0 %409  ;;  %v366_v49 = vpop.permute.xlu1 %365  ;;  %v756_v51 = vpack.c.bf16 %v379_v46, %v339_v45  ;;  %v760_v52 = vpack.c.bf16 %v141_v47, %v965_v35  ;;  %v142_v35 = vsel %vm137_vm0, %v859_v41, %v860_v59 }
 0x11d   :  { %v378_v55 = vsel %vm377_vm6, %v366_v49, %v854_v43  ;;  %v777_v8 = vpack.c.bf16 %v142_v35, %v986_v50 }
 0x11e   :  { %v758_v58 = vpack.c.bf16 %v378_v55, %v338_v54  ;;  %757 = vmatprep.subr.bf16.mxu0 %v756_v51  ;;  %761 = vmatprep.subr.bf16.mxu1 %v760_v52 }
 0x11f   :  { %763 = vmatpush1.bf16.msra.mxu1 %v762_v57 }
 0x120   :  { %v863_v60 = vpop.permute.xlu0 %862  ;;  %v408_v62 = vpop.permute.xlu1 %407  ;;  %759 = vmatpush1.bf16.msra.mxu0 %v758_v58 }
 0x121   :  { %v419_v63 = vsel %vm417_vm7, %v408_v62, %v1076_v48  ;;  %v865_v9 = vunpack.i.h.bf16 %v863_v60  ;;  %v864_v10 = vunpack.i.l.bf16 %v863_v60 }
 0x122   :  { %505 = vmatprep.subr.mxu0 %v419_v63 }
 0x123   :  { %v182_v25 = vsel %vm177_vm1, %v864_v10, %v865_v9  ;;  %v181_v26 = vsel %vm177_vm1, %v825_v14, %v864_v10 }
 0x124   :  { %v873_v0 = vpop.permute.xlu0 %872  ;;  %v406_v2 = vpop.permute.xlu1 %405 }
 0x125   :  { %v418_v3 = vsel %vm417_vm7, %v406_v2, %v408_v62  ;;  %v875_v19 = vunpack.i.h.bf16 %v873_v0  ;;  %v874_v22 = vunpack.i.l.bf16 %v873_v0 }
 0x126   :  { %506 = vmatpush1.msra.mxu0 %v418_v3 }
 0x127   :  { %710 = vmatmul.mubr.msk.f32.vlgmr.msra.gmra.mrb[0].mxu0 %vm485_vm8, %v1088_v33  ;;  %776 = vmatprep.subr.bf16.mxu0 %v901_v11  ;;  %v262_v36 = vsel %vm257_vm3, %v874_v22, %v875_v19  ;;  %v261_v41 = vsel %vm257_vm3, %v845_v13, %v874_v22 }
 0x128   :  { %v296_v15 = vpop.permute.xlu0 %295  ;;  %v868_v17 = vpop.permute.xlu1 %867  ;;  %778 = vmatpush3.bf16.msra.mxu0 %v777_v8  ;;  %741 = vmatprep.mubr.msk.f32.mxu0 %vm902_vm9, %v899_v53 }
 0x129   :  { %v870_v18 = vunpack.i.h.bf16 %v868_v17  ;;  %v869_v50 = vunpack.i.l.bf16 %v868_v17  ;;  %779 = vmatprep.subr.bf16.mxu0 %v901_v11 }
 0x12b   :  { %v222_v61 = vsel %vm217_vm2, %v869_v50, %v870_v18  ;;  %v221_v27 = vsel %vm217_vm2, %v830_v6, %v869_v50 }
 0x12c   :  { %v780_v28 = vpack.c.bf16 %v222_v61, %v182_v25  ;;  %v888_v29 = vpop.permute.xlu0 %887  ;;  %v878_v12 = vpop.permute.xlu1 %877  ;;  %v764_v30 = vpack.c.bf16 %v221_v27, %v181_v26 }
 0x12d   :  { %v880_v32 = vunpack.i.h.bf16 %v878_v12  ;;  %v879_v5 = vunpack.i.l.bf16 %v878_v12  ;;  %v890_v38 = vunpack.i.h.bf16 %v888_v29  ;;  %v889_v39 = vunpack.i.l.bf16 %v888_v29 }
 0x12e   :  { %765 = vmatprep.subr.bf16.mxu1 %v764_v30  ;;  %781 = vmatpush3.bf16.msra.mxu0 %v780_v28 }
 0x12f   :  { %v302_v43 = vsel %vm297_vm4, %v880_v32, %v296_v15  ;;  %767 = vmatpush1.bf16.msra.mxu1 %v766_v34  ;;  %782 = vmatprep.subr.bf16.mxu0 %v901_v11  ;;  %v301_v56 = vsel %vm297_vm4, %v879_v5, %v880_v32  ;;  %v300_v1 = vsel %vm297_vm4, %v840_v24, %v879_v5 }
 0x130   :  { %v783_v4 = vpack.c.bf16 %v302_v43, %v262_v36  ;;  %v883_v16 = vpop.permute.xlu1 %882  ;;  %v768_v44 = vpack.c.bf16 %v301_v56, %v261_v41  ;;  %v770_v45 = vpack.c.bf16 %v300_v1, %v260_v7  ;;  %v376_v49 = vpop.permute.xlu0 %375  ;;  %v381_v51 = vsel %vm377_vm6, %v889_v39, %v890_v38 }
 0x131   :  { %v885_v46 = vunpack.i.h.bf16 %v883_v16  ;;  %v884_v47 = vunpack.i.l.bf16 %v883_v16  ;;  %v380_v24 = vsel %vm377_vm6, %v855_v42, %v889_v39  ;;  %v382_v58 = vsel %vm377_vm6, %v890_v38, %v376_v49 }
 0x132   :  { %769 = vmatprep.subr.bf16.mxu1 %v768_v44  ;;  %784 = vmatpush3.bf16.msra.mxu0 %v783_v4 }
 0x133   :  { %771 = vmatpush1.bf16.msra.mxu1 %v770_v45  ;;  %v341_v52 = vsel %vm337_vm5, %v884_v47, %v885_v46  ;;  %v340_v21 = vsel %vm337_vm5, %v850_v37, %v884_v47  ;;  %785 = vmatprep.subr.bf16.mxu0 %v901_v11 }
 0x134   :  { %v336_v54 = vpop.permute.xlu1 %335  ;;  %v772_v55 = vpack.c.bf16 %v381_v51, %v341_v52  ;;  %v774_v57 = vpack.c.bf16 %v380_v24, %v340_v21  ;;  %v414_v62 = vpop.permute.xlu0 %413 }
 0x135   :  { %v342_v59 = vsel %vm337_vm5, %v885_v46, %v336_v54 }
 0x136   :  { %v786_v60 = vpack.c.bf16 %v382_v58, %v342_v59  ;;  %773 = vmatprep.subr.bf16.mxu1 %v772_v55 }
 0x137   :  { %775 = vmatpush1.bf16.msra.mxu1 %v774_v57 }
 0x138   :  { %v412_v63 = vpop.permute.xlu1 %411  ;;  %787 = vmatpush3.bf16.msra.mxu0 %v786_v60 }
 0x139   :  { %v421_v20 = vsel %vm417_vm7, %v412_v63, %v414_v62  ;;  %v420_v37 = vsel %vm417_vm7, %v1076_v48, %v412_v63  ;;  %739 = vmatprep.subr.mxu0 %v899_v53 }
 0x13a   :  { %576 = vmatprep.subr.mxu1 %v421_v20 }
 0x13b   :  { %577 = vmatpush1.msra.mxu1 %v420_v37 }
 0x13c   :  { %v416_v40 = vpop.permute.xlu1 %415  ;;  %711 = vmatmul.mubr.msk.f32.vlgmr.msra.gmra.mrb[0].mxu1 %vm485_vm8, %v1088_v33 }
 0x13d   :  { %v422_v42 = vsel %vm417_vm7, %v414_v62, %v416_v40 }
 0x13e   :  { %740 = vmatpush3.msra.mxu0 %v422_v42 }
 0x13f   :  { %742 = vmatmul.mubr.msk.f32.vlgmr.msra.gmra.mrb[2].mxu0 %vm485_vm8, %v1088_v33 }
 0x145   :  { %v483_v35 = vpop.permute.xlu0 %482 }
 0x1fa   :  { %v555_v0 = vpop.f32.mrb[0].mxu0 }
 0x1fb   :  { %v556_v2 = vadd.f32 %v555_v0, %v483_v35  ;;  %v557_v3 = vpop.f32.mrb[1].mxu0 }
 0x1fc   :  { %v558_v6 = vadd.f32 %v557_v3, %v483_v35 }
 0x1fd   :  { %701 = vst [vmem:[%s1158_s6] sm:$0xff] %v556_v2 }
 0x1fe   :  { %702 = vst [vmem:[%s1158_s6 + $0x8] sm:$0xff] %v558_v6 }
 0x20f   :  { %v626_v53 = vpop.f32.mrb[0].mxu1 }
 0x210   :  { %v627_v48 = vadd.f32 %v626_v53, %v483_v35  ;;  %v628_v8 = vpop.f32.mrb[1].mxu1 }
 0x211   :  { %v629_v9 = vadd.f32 %v628_v8, %v483_v35 }
 0x212   :  { %703 = vst [vmem:[%s1158_s6 + $0x10] sm:$0xff] %v627_v48  ;;  %v697_v33 = vpop.f32.mrb[2].mxu0 }
 0x213   :  { %704 = vst [vmem:[%s1158_s6 + $0x18] sm:$0xff] %v629_v9  ;;  %v698_v10 = vadd.f32 %v697_v33, %v483_v35  ;;  %v743_v11 = vpop.f32.mrb[3].mxu0 }
 0x215   :  { %705 = vst [vmem:[%s1158_s6 + $0x20] sm:$0xff] %v698_v10 }

// kernel: dense_block_forward.3
= control target key start
LH: loop header
LB: loop body
LE: loop exit
PB: predicated region body
PF: predicated region fallthrough
CT: control target
= control target key end

     0   :  { %v891_v0 = vmov 0   ;;  %v61_v3 = vlaneseq  ;;  %s893_s9 = smov 127   ;;  %s894_s14 = smov 117   ;;  %v899_v53 = vmov 0.0   ;;  %vm137_vm0 = vcmask 1039360   ;;  %s1152_s0 = inlined_call_operand.vmem [shape: f32[8,1], index: 0, kind: input, shape index: {}]   ;;  %s1153_s1 = inlined_call_operand.vmem [shape: f32[8,1], index: 1, kind: input, shape index: {}]   ;;  %s1154_s4 = inlined_call_operand.vmem [shape: f32[8,768], index: 4, kind: input, shape index: {}]   ;;  %s1155_s3 = inlined_call_operand.vmem [shape: f32[1,768], index: 3, kind: input, shape index: {}]   ;;  %s1156_s2 = inlined_call_operand.vmem [shape: f32[8,1], index: 2, kind: input, shape index: {}]   ;;  %s1157_s5 = inlined_call_operand.vmem [shape: f32[8,72], index: 5, kind: input, shape index: {}]   ;;  %s1158_s6 = inlined_call_operand.vmem [shape: f32[8,640], index: 6, kind: output, shape index: {}]  }
   0x1   :  { %800 = vset.pattern.permute.xlu0 %v891_v0  ;;  %v29_v1 = vld [vmem:[%s1152_s0] sm:$0xff]  ;;  %v24_v6 = vld [vmem:[%s1154_s4 + $0x8] sm:$0xff]  ;;  %v25_v7 = vld [vmem:[%s1154_s4 + $0x10] sm:$0xff]  ;;  %s895_s15 = smov 118   ;;  %s897_s16 = smov 116   ;;  %553 = vmatprep.mubr.f32.mxu0 %v899_v53  ;;  %vm177_vm1 = vcmask 1031168  }
   0x2   :  { %32 = vperm.xlu0 %800, %v29_v1   ;;  %v41_v2 = vld [vmem:[%s1153_s1] sm:$0xff]  ;;  %v62_v4 = vshrl.u32 %v61_v3, 7  ;;  %v26_v8 = vld [vmem:[%s1154_s4 + $0x18] sm:$0xff]  ;;  %v28_v39 = vld [vmem:[%s1154_s4 + $0x28] sm:$0xff]  ;;  %s898_s17 = smov 107   ;;  %624 = vmatprep.mubr.f32.mxu1 %v899_v53  ;;  %s900_s18 = smov 106  }
   0x3   :  { %v23_v5 = vld [vmem:[%s1154_s4] sm:$0xff]  ;;  %vm217_vm2 = vcmask 965632   ;;  %vm257_vm3 = vcmask 957440   ;;  %vm297_vm4 = vcmask 949248   ;;  %vm337_vm5 = vcmask 883712  }
   0x4   :  { %v67_v10 = vsub.s32 1, %v62_v4  ;;  %v71_v11 = vsub.s32 2, %v62_v4  ;;  %v59_v12 = vld [vmem:[%s1155_s3] sm:$0x3f]  ;;  %v63_v13 = vsub.s32 0, %v62_v4  ;;  %v75_v14 = vsub.s32 3, %v62_v4 }
   0x5   :  { %s892_s3 = smov 126   ;;  %v27_v38 = vld [vmem:[%s1154_s4 + $0x20] sm:$0xff]  ;;  %v79_v42 = vsub.s32 4, %v62_v4  ;;  %v83_v43 = vsub.s32 5, %v62_v4  ;;  %s896_s4 = smov 108   ;;  %vm377_vm6 = vcmask 875520  }
   0x6   :  { %44 = vperm.xlu0 %800, %v41_v2   ;;  %v68_v19 = vrot.slane %v59_v12, %v67_v10  ;;  %v72_v20 = vrot.slane %v59_v12, %v71_v11  ;;  %v64_v26 = vrot.slane %v59_v12, %v63_v13  ;;  %v76_v27 = vrot.slane %v59_v12, %v75_v14  ;;  %v479_v55 = vld [vmem:[%s1156_s2] sm:$0xff] }
   0x7   :  { %v80_v46 = vrot.slane %v59_v12, %v79_v42  ;;  %v84_v47 = vrot.slane %v59_v12, %v83_v43  ;;  %vm417_vm7 = vcmask 867328   ;;  %vm485_vm8 = vcmask 588800  }
   0x8   :  { %vm902_vm9 = vmmov 0  }
  0x81   :  { %v33_v9 = vpop.permute.xlu0 %32 }
  0x82   :  { %v35_v15 = vmul.f32 %v33_v9, %v23_v5  ;;  %v36_v16 = vmul.f32 %v33_v9, %v24_v6  ;;  %v37_v17 = vmul.f32 %v33_v9, %v25_v7  ;;  %v38_v18 = vmul.f32 %v33_v9, %v26_v8 }
  0x83   :  { %v39_v40 = vmul.f32 %v33_v9, %v27_v38  ;;  %v40_v41 = vmul.f32 %v33_v9, %v28_v39 }
  0x85   :  { %v45_v21 = vpop.permute.xlu0 %44 }
  0x86   :  { %v47_v22 = vadd.f32 %v45_v21, %v35_v15  ;;  %v48_v23 = vadd.f32 %v45_v21, %v36_v16  ;;  %v49_v24 = vadd.f32 %v45_v21, %v37_v17  ;;  %v50_v25 = vadd.f32 %v45_v21, %v38_v18 }
  0x87   :  { %v51_v44 = vadd.f32 %v45_v21, %v39_v40  ;;  %v52_v45 = vadd.f32 %v45_v21, %v40_v41 }
  0x88   :  { %v53_v28 = vmax.f32 %v47_v22, 0.0  ;;  %v54_v29 = vmax.f32 %v48_v23, 0.0  ;;  %v55_v30 = vmax.f32 %v49_v24, 0.0  ;;  %v56_v31 = vmax.f32 %v50_v25, 0.0 }
  0x89   :  { %v57_v48 = vmax.f32 %v51_v44, 0.0  ;;  %v58_v49 = vmax.f32 %v52_v45, 0.0 }
  0x8a   :  { %v959_v32 = vmul.f32 %v68_v19, %v54_v29  ;;  %v961_v33 = vmul.f32 %v72_v20, %v55_v30  ;;  %v963_v34 = vmul.f32 %v64_v26, %v53_v28  ;;  %v965_v35 = vmul.f32 %v76_v27, %v56_v31 }
  0x8b   :  { %v986_v50 = vmul.f32 %v80_v46, %v57_v48  ;;  %v96_v51 = vmul.f32 %v84_v47, %v58_v49 }
  0x8c   :  { %v811_v36 = vpack.i.bf16 %v961_v33, %v959_v32  ;;  %v821_v37 = vpack.i.bf16 %v965_v35, %v963_v34 }
  0x8d   :  { %v856_v52 = vpack.i.bf16 %v96_v51, %v986_v50  ;;  %v886_v54 = vpack.i.bf16 %v986_v50, %v965_v35 }
  0x8e   :  { %812 = vrot.lane.b32.xlu0 %v811_v36, %s892_s3  ;;  %802 = vrot.lane.b32.xlu1 %v811_v36, %s893_s9 }
  0x92   :  { %822 = vrot.lane.b32.xlu0 %v821_v37, %s892_s3  ;;  %807 = vrot.lane.b32.xlu1 %v821_v37, %s893_s9 }
  0x96   :  { %832 = vrot.lane.b32.xlu0 %v811_v36, %s894_s14  ;;  %817 = vrot.lane.b32.xlu1 %v811_v36, %s895_s15 }
  0x9a   :  { %842 = vrot.lane.b32.xlu0 %v821_v37, %s894_s14  ;;  %827 = vrot.lane.b32.xlu1 %v821_v37, %s895_s15 }
  0x9e   :  { %847 = vrot.lane.b32.xlu0 %v811_v36, %s896_s4  ;;  %837 = vrot.lane.b32.xlu1 %v811_v36, %s897_s16 }
  0xa2   :  { %325 = vrot.lane.b32.xlu0 %v963_v34, %s896_s4  ;;  %285 = vrot.lane.b32.xlu1 %v963_v34, %s897_s16 }
  0xa6   :  { %857 = vrot.lane.b32.xlu0 %v856_v52, %s893_s9  ;;  %852 = vrot.lane.b32.xlu1 %v811_v36, %s898_s17 }
  0xaa   :  { %409 = vrot.lane.b32.xlu0 %v961_v33, %s900_s18  ;;  %365 = vrot.lane.b32.xlu1 %v963_v34, %s898_s17 }
  0xae   :  { %862 = vrot.lane.b32.xlu0 %v856_v52, %s892_s3  ;;  %407 = vrot.lane.b32.xlu1 %v959_v32, %s900_s18 }
  0xb2   :  { %872 = vrot.lane.b32.xlu0 %v856_v52, %s894_s14  ;;  %405 = vrot.lane.b32.xlu1 %v963_v34, %s900_s18 }
  0xb6   :  { %295 = vrot.lane.b32.xlu0 %v96_v51, %s897_s16  ;;  %867 = vrot.lane.b32.xlu1 %v856_v52, %s895_s15 }
  0xba   :  { %887 = vrot.lane.b32.xlu0 %v886_v54, %s898_s17  ;;  %877 = vrot.lane.b32.xlu1 %v886_v54, %s897_s16 }
  0xbe   :  { %375 = vrot.lane.b32.xlu0 %v96_v51, %s898_s17  ;;  %882 = vrot.lane.b32.xlu1 %v886_v54, %s896_s4 }
  0xc2   :  { %413 = vrot.lane.b32.xlu0 %v986_v50, %s900_s18  ;;  %335 = vrot.lane.b32.xlu1 %v96_v51, %s896_s4 }
  0xc6   :  { %482 = vperm.xlu0 %800, %v479_v55   ;;  %411 = vrot.lane.b32.xlu1 %v965_v35, %s900_s18 }
  0xca   :  { %415 = vrot.lane.b32.xlu1 %v96_v51, %s900_s18 }
 0x100   :  { %v1011_v56 = vpop.permute.xlu0 %812  ;;  %v1013_v57 = vpop.permute.xlu1 %802 }
 0x101   :  { %v805_v58 = vunpack.i.h.bf16 %v1013_v57  ;;  %v804_v59 = vunpack.i.l.bf16 %v1013_v57  ;;  %v815_v1 = vunpack.i.h.bf16 %v1011_v56  ;;  %v814_v2 = vunpack.i.l.bf16 %v1011_v56 }
 0x103   :  { %v139_v60 = vsel %vm137_vm0, %v804_v59, %v805_v58  ;;  %v179_v10 = vsel %vm177_vm1, %v814_v2, %v815_v1 }
 0x104   :  { %v1018_v61 = vpop.permute.xlu0 %822  ;;  %v808_v62 = vpop.permute.xlu1 %807  ;;  %v744_v63 = vpack.c.bf16 %v139_v60, %v959_v32 }
 0x105   :  { %v809_v0 = vunpack.i.l.bf16 %v808_v62  ;;  %v824_v9 = vunpack.i.l.bf16 %v1018_v61 }
 0x106   :  { %745 = vmatprep.subr.bf16.mxu0 %v744_v63 }
 0x107   :  { %v138_v3 = vsel %vm137_vm0, %v809_v0, %v804_v59  ;;  %v178_v18 = vsel %vm177_vm1, %v824_v9, %v814_v2 }
 0x108   :  { %v1024_v4 = vpop.permute.xlu0 %832  ;;  %v1026_v5 = vpop.permute.xlu1 %817  ;;  %v746_v6 = vpack.c.bf16 %v138_v3, %v963_v34  ;;  %v810_v34 = vunpack.i.h.bf16 %v808_v62 }
 0x109   :  { %v820_v7 = vunpack.i.h.bf16 %v1026_v5  ;;  %v819_v8 = vunpack.i.l.bf16 %v1026_v5  ;;  %v835_v16 = vunpack.i.h.bf16 %v1024_v4  ;;  %v834_v17 = vunpack.i.l.bf16 %v1024_v4 }
 0x10a   :  { %747 = vmatpush1.bf16.msra.mxu0 %v746_v6  ;;  %v140_v44 = vsel %vm137_vm0, %v805_v58, %v810_v34 }
 0x10b   :  { %v219_v11 = vsel %vm217_vm2, %v819_v8, %v820_v7  ;;  %v259_v26 = vsel %vm257_vm3, %v834_v17, %v835_v16  ;;  %v762_v57 = vpack.c.bf16 %v140_v44, %v961_v33  ;;  %v1088_v33 = vld [vmem:[%s1157_s5] sm:$0xff] }
 0x10c   :  { %v1038_v12 = vpop.permute.xlu0 %842  ;;  %v1040_v13 = vpop.permute.xlu1 %827  ;;  %v748_v14 = vpack.c.bf16 %v219_v11, %v179_v10  ;;  %v901_v11 = vmov 0.0|0.0  }
 0x10d   :  { %v829_v15 = vunpack.i.l.bf16 %v1040_v13  ;;  %v844_v23 = vunpack.i.l.bf16 %v1038_v12  ;;  %v830_v6 = vunpack.i.h.bf16 %v1040_v13  ;;  %v845_v13 = vunpack.i.h.bf16 %v1038_v12 }
 0x10e   :  { %749 = vmatprep.subr.bf16.mxu0 %v748_v14  ;;  %v825_v14 = vunpack.i.h.bf16 %v1018_v61 }
 0x10f   :  { %v218_v19 = vsel %vm217_vm2, %v829_v15, %v819_v8  ;;  %v258_v31 = vsel %vm257_vm3, %v844_v23, %v834_v17  ;;  %v220_v23 = vsel %vm217_vm2, %v820_v7, %v830_v6  ;;  %v260_v7 = vsel %vm257_vm3, %v835_v16, %v845_v13 }
 0x110   :  { %v1047_v20 = vpop.permute.xlu0 %847  ;;  %v1049_v21 = vpop.permute.xlu1 %837  ;;  %v750_v22 = vpack.c.bf16 %v218_v19, %v178_v18 }
 0x111   :  { %v840_v24 = vunpack.i.h.bf16 %v1049_v21  ;;  %v839_v25 = vunpack.i.l.bf16 %v1049_v21  ;;  %v850_v37 = vunpack.i.h.bf16 %v1047_v20  ;;  %v849_v38 = vunpack.i.l.bf16 %v1047_v20 }
 0x112   :  { %751 = vmatpush1.bf16.msra.mxu0 %v750_v22 }
 0x113   :  { %v299_v27 = vsel %vm297_vm4, %v839_v25, %v840_v24  ;;  %v339_v45 = vsel %vm337_vm5, %v849_v38, %v850_v37 }
 0x114   :  { %v326_v28 = vpop.permute.xlu0 %325  ;;  %v286_v29 = vpop.permute.xlu1 %285  ;;  %v752_v30 = vpack.c.bf16 %v299_v27, %v259_v26 }
 0x115   :  { %v298_v32 = vsel %vm297_vm4, %v286_v29, %v839_v25  ;;  %v338_v54 = vsel %vm337_vm5, %v326_v28, %v849_v38 }
 0x116   :  { %v754_v36 = vpack.c.bf16 %v298_v32, %v258_v31  ;;  %753 = vmatprep.subr.bf16.mxu0 %v752_v30  ;;  %v180_v31 = vsel %vm177_vm1, %v815_v1, %v825_v14 }
 0x118   :  { %v858_v39 = vpop.permute.xlu0 %857  ;;  %v1064_v40 = vpop.permute.xlu1 %852  ;;  %755 = vmatpush1.bf16.msra.mxu0 %v754_v36 }
 0x119   :  { %v859_v41 = vunpack.i.l.bf16 %v858_v39  ;;  %v855_v42 = vunpack.i.h.bf16 %v1064_v40  ;;  %v854_v43 = vunpack.i.l.bf16 %v1064_v40  ;;  %v860_v59 = vunpack.i.h.bf16 %v858_v39 }
 0x11b   :  { %v379_v46 = vsel %vm377_vm6, %v854_v43, %v855_v42  ;;  %v141_v47 = vsel %vm137_vm0, %v810_v34, %v859_v41  ;;  %v766_v34 = vpack.c.bf16 %v220_v23, %v180_v31 }
 0x11c   :  { %v1076_v48 = vpop.permute.xlu0 %409  ;;  %v366_v49 = vpop.permute.xlu1 %365  ;;  %v756_v51 = vpack.c.bf16 %v379_v46, %v339_v45  ;;  %v760_v52 = vpack.c.bf16 %v141_v47, %v965_v35  ;;  %v142_v35 = vsel %vm137_vm0, %v859_v41, %v860_v59 }
 0x11d   :  { %v378_v55 = vsel %vm377_vm6, %v366_v49, %v854_v43  ;;  %v777_v8 = vpack.c.bf16 %v142_v35, %v986_v50 }
 0x11e   :  { %v758_v58 = vpack.c.bf16 %v378_v55, %v338_v54  ;;  %757 = vmatprep.subr.bf16.mxu0 %v756_v51  ;;  %761 = vmatprep.subr.bf16.mxu1 %v760_v52 }
 0x11f   :  { %763 = vmatpush1.bf16.msra.mxu1 %v762_v57 }
 0x120   :  { %v863_v60 = vpop.permute.xlu0 %862  ;;  %v408_v62 = vpop.permute.xlu1 %407  ;;  %759 = vmatpush1.bf16.msra.mxu0 %v758_v58 }
 0x121   :  { %v419_v63 = vsel %vm417_vm7, %v408_v62, %v1076_v48  ;;  %v865_v9 = vunpack.i.h.bf16 %v863_v60  ;;  %v864_v10 = vunpack.i.l.bf16 %v863_v60 }
 0x122   :  { %505 = vmatprep.subr.mxu0 %v419_v63 }
 0x123   :  { %v182_v25 = vsel %vm177_vm1, %v864_v10, %v865_v9  ;;  %v181_v26 = vsel %vm177_vm1, %v825_v14, %v864_v10 }
 0x124   :  { %v873_v0 = vpop.permute.xlu0 %872  ;;  %v406_v2 = vpop.permute.xlu1 %405 }
 0x125   :  { %v418_v3 = vsel %vm417_vm7, %v406_v2, %v408_v62  ;;  %v875_v19 = vunpack.i.h.bf16 %v873_v0  ;;  %v874_v22 = vunpack.i.l.bf16 %v873_v0 }
 0x126   :  { %506 = vmatpush1.msra.mxu0 %v418_v3 }
 0x127   :  { %710 = vmatmul.mubr.msk.f32.vlgmr.msra.gmra.mrb[0].mxu0 %vm485_vm8, %v1088_v33  ;;  %776 = vmatprep.subr.bf16.mxu0 %v901_v11  ;;  %v262_v36 = vsel %vm257_vm3, %v874_v22, %v875_v19  ;;  %v261_v41 = vsel %vm257_vm3, %v845_v13, %v874_v22 }
 0x128   :  { %v296_v15 = vpop.permute.xlu0 %295  ;;  %v868_v17 = vpop.permute.xlu1 %867  ;;  %778 = vmatpush3.bf16.msra.mxu0 %v777_v8  ;;  %741 = vmatprep.mubr.msk.f32.mxu0 %vm902_vm9, %v899_v53 }
 0x129   :  { %v870_v18 = vunpack.i.h.bf16 %v868_v17  ;;  %v869_v50 = vunpack.i.l.bf16 %v868_v17  ;;  %779 = vmatprep.subr.bf16.mxu0 %v901_v11 }
 0x12b   :  { %v222_v61 = vsel %vm217_vm2, %v869_v50, %v870_v18  ;;  %v221_v27 = vsel %vm217_vm2, %v830_v6, %v869_v50 }
 0x12c   :  { %v780_v28 = vpack.c.bf16 %v222_v61, %v182_v25  ;;  %v888_v29 = vpop.permute.xlu0 %887  ;;  %v878_v12 = vpop.permute.xlu1 %877  ;;  %v764_v30 = vpack.c.bf16 %v221_v27, %v181_v26 }
 0x12d   :  { %v880_v32 = vunpack.i.h.bf16 %v878_v12  ;;  %v879_v5 = vunpack.i.l.bf16 %v878_v12  ;;  %v890_v38 = vunpack.i.h.bf16 %v888_v29  ;;  %v889_v39 = vunpack.i.l.bf16 %v888_v29 }
 0x12e   :  { %765 = vmatprep.subr.bf16.mxu1 %v764_v30  ;;  %781 = vmatpush3.bf16.msra.mxu0 %v780_v28 }
 0x12f   :  { %v302_v43 = vsel %vm297_vm4, %v880_v32, %v296_v15  ;;  %767 = vmatpush1.bf16.msra.mxu1 %v766_v34  ;;  %782 = vmatprep.subr.bf16.mxu0 %v901_v11  ;;  %v301_v56 = vsel %vm297_vm4, %v879_v5, %v880_v32  ;;  %v300_v1 = vsel %vm297_vm4, %v840_v24, %v879_v5 }
 0x130   :  { %v783_v4 = vpack.c.bf16 %v302_v43, %v262_v36  ;;  %v883_v16 = vpop.permute.xlu1 %882  ;;  %v768_v44 = vpack.c.bf16 %v301_v56, %v261_v41  ;;  %v770_v45 = vpack.c.bf16 %v300_v1, %v260_v7  ;;  %v376_v49 = vpop.permute.xlu0 %375  ;;  %v381_v51 = vsel %vm377_vm6, %v889_v39, %v890_v38 }
 0x131   :  { %v885_v46 = vunpack.i.h.bf16 %v883_v16  ;;  %v884_v47 = vunpack.i.l.bf16 %v883_v16  ;;  %v380_v24 = vsel %vm377_vm6, %v855_v42, %v889_v39  ;;  %v382_v58 = vsel %vm377_vm6, %v890_v38, %v376_v49 }
 0x132   :  { %769 = vmatprep.subr.bf16.mxu1 %v768_v44  ;;  %784 = vmatpush3.bf16.msra.mxu0 %v783_v4 }
 0x133   :  { %771 = vmatpush1.bf16.msra.mxu1 %v770_v45  ;;  %v341_v52 = vsel %vm337_vm5, %v884_v47, %v885_v46  ;;  %v340_v21 = vsel %vm337_vm5, %v850_v37, %v884_v47  ;;  %785 = vmatprep.subr.bf16.mxu0 %v901_v11 }
 0x134   :  { %v336_v54 = vpop.permute.xlu1 %335  ;;  %v772_v55 = vpack.c.bf16 %v381_v51, %v341_v52  ;;  %v774_v57 = vpack.c.bf16 %v380_v24, %v340_v21  ;;  %v414_v62 = vpop.permute.xlu0 %413 }
 0x135   :  { %v342_v59 = vsel %vm337_vm5, %v885_v46, %v336_v54 }
 0x136   :  { %v786_v60 = vpack.c.bf16 %v382_v58, %v342_v59  ;;  %773 = vmatprep.subr.bf16.mxu1 %v772_v55 }
 0x137   :  { %775 = vmatpush1.bf16.msra.mxu1 %v774_v57 }
 0x138   :  { %v412_v63 = vpop.permute.xlu1 %411  ;;  %787 = vmatpush3.bf16.msra.mxu0 %v786_v60 }
 0x139   :  { %v421_v20 = vsel %vm417_vm7, %v412_v63, %v414_v62  ;;  %v420_v37 = vsel %vm417_vm7, %v1076_v48, %v412_v63  ;;  %739 = vmatprep.subr.mxu0 %v899_v53 }
 0x13a   :  { %576 = vmatprep.subr.mxu1 %v421_v20 }
 0x13b   :  { %577 = vmatpush1.msra.mxu1 %v420_v37 }
 0x13c   :  { %v416_v40 = vpop.permute.xlu1 %415  ;;  %711 = vmatmul.mubr.msk.f32.vlgmr.msra.gmra.mrb[0].mxu1 %vm485_vm8, %v1088_v33 }
 0x13d   :  { %v422_v42 = vsel %vm417_vm7, %v414_v62, %v416_v40 }
 0x13e   :  { %740 = vmatpush3.msra.mxu0 %v422_v42 }
 0x13f   :  { %742 = vmatmul.mubr.msk.f32.vlgmr.msra.gmra.mrb[2].mxu0 %vm485_vm8, %v1088_v33 }
 0x145   :  { %v483_v35 = vpop.permute.xlu0 %482 }
 0x1fa   :  { %v555_v0 = vpop.f32.mrb[0].mxu0 }
 0x1fb   :  { %v556_v2 = vadd.f32 %v555_v0, %v483_v35  ;;  %v557_v3 = vpop.f32.mrb[1].mxu0 }
 0x1fc   :  { %v558_v6 = vadd.f32 %v557_v3, %v483_v35 }
 0x1fd   :  { %701 = vst [vmem:[%s1158_s6] sm:$0xff] %v556_v2 }
 0x1fe   :  { %702 = vst [vmem:[%s1158_s6 + $0x8] sm:$0xff] %v558_v6 }
 0x20f   :  { %v626_v53 = vpop.f32.mrb[0].mxu1 }
 0x210   :  { %v627_v48 = vadd.f32 %v626_v53, %v483_v35  ;;  %v628_v8 = vpop.f32.mrb[1].mxu1 }
 0x211   :  { %v629_v9 = vadd.f32 %v628_v8, %v483_v35 }
 0x212   :  { %703 = vst [vmem:[%s1158_s6 + $0x10] sm:$0xff] %v627_v48  ;;  %v697_v33 = vpop.f32.mrb[2].mxu0 }
 0x213   :  { %704 = vst [vmem:[%s1158_s6 + $0x18] sm:$0xff] %v629_v9  ;;  %v698_v10 = vadd.f32 %v697_v33, %v483_v35  ;;  %v743_v11 = vpop.f32.mrb[3].mxu0 }
 0x215   :  { %705 = vst [vmem:[%s1158_s6 + $0x20] sm:$0xff] %v698_v10 }

</bundles_post_ra>
